<compile_context>
chip_gen: v7x
topology: tpu7x:2x2x1
jax: 0.10.0
libtpu: 0.0.40
codegen_flags: <defaults>
</compile_context>

<pallas_src>
import jax
import jax.numpy as jnp
from jax import lax
from jax.experimental import pallas as pl
from jax.experimental.pallas import tpu as pltpu

_LANE = 128


def _round_up(x, m):
    return -(-x // m) * m


def _linear_kernel(x_ref, w_ref, b_ref, o_ref):
    # x_ref: (TB, D)            streamed batch tile (pipelined)
    # w_ref: (out_features, D)  resident, lane-dense along D (PyTorch layout)
    # b_ref: (1, out_features)  resident, f32
    # o_ref: (TB, out_features) f32
    acc = lax.dot_general(
        x_ref[...], w_ref[...],
        dimension_numbers=(((1,), (1,)), ((), ())),   # x @ W^T
        preferred_element_type=jnp.float32,
    )
    o_ref[...] = (acc + b_ref[...]).astype(o_ref.dtype)


def _vmem_budget_bytes():
    """Generation-aware scoped-VMEM budget (bytes) we are willing to request."""
    try:
        physical = int(pltpu.get_tpu_info().vmem_capacity_bytes)
    except Exception:
        physical = 64 * 1024 * 1024  # conservative fallback (v7x-sized)
    # Leave 25% headroom for compiler-internal scratch; never ask for > 96 MiB.
    return min(int(physical * 0.75), 96 * 1024 * 1024)


def logistic_regression_forward(x, weight, bias, *, tb_max=8192, use_bf16=False):
    """x: (B, D), weight: (out, D), bias: (out,) -> (B, out) in x.dtype (f32)."""
    B, D = x.shape
    out_features = weight.shape[0]
    out_dtype = x.dtype

    if use_bf16:
        # bf16 streaming fast path: halve HBM bytes for x and W; accumulate in
        # f32 on the MXU and do the bias add in f32 (safe on v5e too).
        compute_dtype = jnp.bfloat16
        x = x.astype(compute_dtype)
        weight = weight.astype(compute_dtype)
    else:
        compute_dtype = x.dtype

    b2 = bias.astype(jnp.float32).reshape(1, out_features)  # 2D for TPU layout

    itemsize_c = jnp.dtype(compute_dtype).itemsize
    itemsize_o = jnp.dtype(out_dtype).itemsize
    sublane = 16 if itemsize_c == 2 else 8  # bf16 packs 2 rows / sublane

    # --- Padding-correct per-block VMEM footprints -------------------------
    x_row_bytes = _round_up(D, _LANE) * itemsize_c                       # per row of x tile
    o_row_bytes = _round_up(out_features, _LANE) * itemsize_o            # per row of out tile
    w_bytes = _round_up(out_features, sublane) * _round_up(D, _LANE) * itemsize_c
    b_bytes = 8 * _round_up(out_features, _LANE) * 4
    resident_bytes = 2 * (w_bytes + b_bytes)          # count 2x: Pallas double-buffers inputs
    per_row_stream = 2 * x_row_bytes + 2 * o_row_bytes  # double-buffered x + out tiles

    # --- Tile selection -----------------------------------------------------
    budget = _vmem_budget_bytes()
    tb_budget = max(sublane, (budget - resident_bytes) // per_row_stream)
    tb_budget = (tb_budget // sublane) * sublane

    if B <= 2 * sublane:
        # Tiny batch: single full-extent block (always layout-legal).
        tb = B
    else:
        tb = min(tb_budget, tb_max)
        # At least 2 grid steps so the "parallel" batch axis can be split
        # across both v7x TensorCores (harmless on v5e/v6e's single TC).
        tb = min(tb, _round_up(pl.cdiv(B, 2), sublane))
        tb = max(sublane, (tb // sublane) * sublane)   # sublane-aligned -> legal block
    grid = (pl.cdiv(B, tb),)

    # --- Scoped-VMEM request (padded, double-buffered, with headroom) -------
    vmem_need = resident_bytes + tb * per_row_stream
    vmem_limit = int(min(max(int(vmem_need * 1.5) + (1 << 20), 1 << 20), budget))

    # NOTE: if tb ever becomes VMEM-capped (large D), pipeline_mode=pl.Buffered(3)
    # on the x BlockSpec can hide exposed DMA latency; not needed at these shapes.
    return pl.pallas_call(
        _linear_kernel,
        out_shape=jax.ShapeDtypeStruct((B, out_features), out_dtype),
        grid=grid,
        in_specs=[
            pl.BlockSpec((tb, D), lambda i: (i, 0)),                # streamed x
            pl.BlockSpec((out_features, D), lambda i: (0, 0)),      # resident W
            pl.BlockSpec((1, out_features), lambda i: (0, 0)),      # resident b
        ],
        out_specs=pl.BlockSpec((tb, out_features), lambda i: (i, 0)),
        compiler_params=pltpu.CompilerParams(
            dimension_semantics=("parallel",),
            vmem_limit_bytes=vmem_limit,
        ),
    )(x, weight, b2)


if __name__ == "__main__":
    key = jax.random.PRNGKey(0)
    k_x, k_w, k_b, k_x2 = jax.random.split(key, 4)

    batch = 8
    input_size = 32

    # Deterministic parameter init (mimics nn.Linear uniform(-1/sqrt(D), 1/sqrt(D))).
    bound = 1.0 / (input_size ** 0.5)
    weight = jax.random.uniform(k_w, (2, input_size), jnp.float32, -bound, bound)
    bias = jax.random.uniform(k_b, (2,), jnp.float32, -bound, bound)

    # Small case (whole batch is one full-extent block).
    x = jax.random.normal(k_x, (batch, input_size), jnp.float32)
    out = logistic_regression_forward(x, weight, bias)
    out = jax.block_until_ready(out)
    ref = x @ weight.T + bias
    assert out.shape == (batch, 2)
    assert jnp.allclose(out, ref, atol=1e-5, rtol=1e-5)

    # Larger case exercising the tiled, pipelined, multi-step path
    # (budget-derived tb, >= 2 grid steps for the parallel batch axis).
    x2 = jax.random.normal(k_x2, (4096, input_size), jnp.float32)
    out2 = logistic_regression_forward(x2, weight, bias)
    out2 = jax.block_until_ready(out2)
    ref2 = x2 @ weight.T + bias
    assert out2.shape == (4096, 2)
    assert jnp.allclose(out2, ref2, atol=1e-5, rtol=1e-5)

    # bf16 streaming fast path (f32 accumulation / bias add / output).
    out3 = logistic_regression_forward(x2, weight, bias, use_bf16=True)
    out3 = jax.block_until_ready(out3)
    assert out3.shape == (4096, 2)
    assert jnp.allclose(out3, ref2, atol=5e-2, rtol=5e-2)

    print("KERNEL_OK")
</pallas_src>

<mosaic_0001>
module attributes {stable_mosaic.version = 11 : i64} {
  func.func @_linear_kernel(%arg0: i32, %arg1: memref<8x32xf32, #tpu.memory_space<vmem>>, %arg2: memref<2x32xf32, #tpu.memory_space<vmem>>, %arg3: memref<1x2xf32, #tpu.memory_space<vmem>>, %arg4: memref<8x2xf32, #tpu.memory_space<vmem>>) attributes {dimension_semantics = [#tpu.dimension_semantics<parallel>], iteration_bounds = array<i64: 1>, scalar_prefetch = 0 : i64, scratch_operands = 0 : i64, tpu.core_type = #tpu.core_type<tc>, window_params = [{transform_indices = @transform_0, window_bounds = array<i64: 8, 32>}, {pipeline_mode = #tpu.pipeline_mode<synchronous>, transform_indices = @transform_1, window_bounds = array<i64: 2, 32>}, {pipeline_mode = #tpu.pipeline_mode<synchronous>, transform_indices = @transform_2, window_bounds = array<i64: 1, 2>}, {transform_indices = @transform_3, window_bounds = array<i64: 8, 2>}]} {
    %c0 = arith.constant 0 : index
    %c0_0 = arith.constant 0 : index
    %0 = vector.load %arg1[%c0, %c0_0] : memref<8x32xf32, #tpu.memory_space<vmem>>, vector<8x32xf32>
    %c0_1 = arith.constant 0 : index
    %c0_2 = arith.constant 0 : index
    %1 = vector.load %arg2[%c0_1, %c0_2] : memref<2x32xf32, #tpu.memory_space<vmem>>, vector<2x32xf32>
    %cst = arith.constant dense<0.000000e+00> : vector<8x2xf32>
    %2 = tpu.matmul %0, %1, %cst {dimension_numbers = #tpu.dot_dimension_numbers<[1], [1], [0], [0], [0, 0, 1, 0], [], []>} : vector<8x32xf32>, vector<2x32xf32>, vector<8x2xf32> -> vector<8x2xf32>
    %c0_3 = arith.constant 0 : index
    %c0_4 = arith.constant 0 : index
    %3 = vector.load %arg3[%c0_3, %c0_4] : memref<1x2xf32, #tpu.memory_space<vmem>>, vector<1x2xf32>
    %4 = vector.broadcast %3 : vector<1x2xf32> to vector<8x2xf32>
    %5 = arith.addf %2, %4 : vector<8x2xf32>
    %c0_5 = arith.constant 0 : index
    %c0_6 = arith.constant 0 : index
    %6 = vector.load %arg4[%c0_5, %c0_6] : memref<8x2xf32, #tpu.memory_space<vmem>>, vector<8x2xf32>
    tpu.vector_store %arg4[%c0_5, %c0_6], %5 {strides = array<i32>} : memref<8x2xf32, #tpu.memory_space<vmem>>, vector<8x2xf32>,
    return
  }
  func.func @transform_0(%arg0: i32) -> (i32, i32) {
    %c0_i32 = arith.constant 0 : i32
    %c0_i32_0 = arith.constant 0 : i32
    return %arg0, %c0_i32 : i32, i32
  }
  func.func @transform_1(%arg0: i32) -> (i32, i32) {
    %c0_i32 = arith.constant 0 : i32
    %c0_i32_0 = arith.constant 0 : i32
    %c0_i32_1 = arith.constant 0 : i32
    return %c0_i32, %c0_i32_0 : i32, i32
  }
  func.func @transform_2(%arg0: i32) -> (i32, i32) {
    %c0_i32 = arith.constant 0 : i32
    %c0_i32_0 = arith.constant 0 : i32
    %c0_i32_1 = arith.constant 0 : i32
    return %c0_i32, %c0_i32_0 : i32, i32
  }
  func.func @transform_3(%arg0: i32) -> (i32, i32) {
    %c0_i32 = arith.constant 0 : i32
    %c0_i32_0 = arith.constant 0 : i32
    return %arg0, %c0_i32 : i32, i32
  }
}

</mosaic_0001>

<bundles_post_ra>
// kernel: tpu_custom_call.1
= control target key start
LH: loop header
LB: loop body
LE: loop exit
PB: predicated region body
PF: predicated region fallthrough
CT: control target
= control target key end

     0   :  { %8 = vsyncpa [#allocation3], 0  ;;  %s156_s12 = smov [#allocation2]   ;;  %s200_s0 = inlined_call_operand.hbm [shape: f32[8,32], index: 0, kind: input, shape index: {}]   ;;  %s201_s1 = inlined_call_operand.vmem [shape: f32[2,32], index: 1, kind: input, shape index: {}]   ;;  %s202_s2 = inlined_call_operand.vmem [shape: f32[1,2], index: 2, kind: input, shape index: {}]   ;;  %s203_s3 = inlined_call_operand.vmem [shape: f32[8,2], index: 3, kind: output, shape index: {}]  }
   0x1   :  { %s15_s13 = sshll.u32 %s156_s12, 4  ;;  %s132_s16 = scalar_lea.hbm %s200_s0, 128  ;;  %s16_s13 = int_to_ptr.vmem [resolvable:$true] %s15_s13 }
   0x2   :  { %p133_p0 = scmp.ne.s32.totalorder %s200_s0, %s132_s16  ;;  %p136_p1 = scmp.lt.u32.totalorder %s132_s16, %s200_s0 }
   0x4   :  { %p138_p2 = pnand %p136_p1, %p133_p0 }
   0x6   :  { %141 = shalt.err (!%p138_p2)
}
   0x7   :  { %s142_s21 = scalar_lea.vmem %s16_s13, 128  ;;  %p147_p4 = scmp.lt.s32.totalorder %s16_s13, %s16_s13 }
   0x8   :  { %p143_p3 = scmp.ne.s32.totalorder %s16_s13, %s142_s21  ;;  %p148_p5 = scmp.lt.s32.totalorder %s142_s21, %s142_s21 }
   0xa   :  { %p149_p6 = por %p148_p5, %p147_p4 }
   0xc   :  { %p150_p7 = pnand %p149_p6, %p143_p3 }
   0xe   :  { %153 = shalt.err (!%p150_p7)
}
   0xf   :  { %18 = dma.hbm_to_vmem [thread:$0]  %s200_s0, 128, %s16_s13, [#allocation3]  }
  0x10   :  { %154 = dma.done.wait [#allocation3], 128  }
  0x11   :  { %155 = vsyncadd [#allocation3], 4294967168  ;;  %v157_v0 = vmov 0.0   ;;  %vm158_vm0 = vmmov 0   ;;  %vm35_vm1 = vcmask 261120   ;;  %v26_v2 = vld [vmem:[#allocation2] sm:$0xff] }
  0x12   :  { %124 = vmatprep.subr.mxu0 %v157_v0  ;;  %126 = vmatprep.mubr.msk.f32.mxu0 %vm158_vm0, %v157_v0  ;;  %v27_v1 = vld [vmem:[%s201_s1] sm:$0x3]  ;;  %vm112_vm2 = vcmask 15360  }
  0x13   :  { %125 = vmatpush3.xpose.msk.msra.mxu0 %vm35_vm1, %v27_v1  ;;  %v119_v3 = vld [vmem:[%s202_s2] ss:$0 sm:$0xff] }
  0x16   :  { %127 = vmatmul.mubr.msk.f32.vlgmr.msra.gmra.mrb[0].mxu0 %vm35_vm1, %v26_v2 }
  0xe9   :  { %v108_v4 = vpop.f32.mrb[0].mxu0 }
  0xea   :  { %v109_v5 = vadd.f32 %v119_v3, %v108_v4  ;;  %v128_v6 = vpop.f32.mrb[1].mxu0 }
  0xec   :  { %113 = vst.msk [vmem:[%s203_s3] sm:$0xff] %vm112_vm2, %v109_v5 }
  0xed   :  { %118 = vsyncpa [#allocation3], 1 }

</bundles_post_ra>
